<compile_context>
chip_gen: v5e
topology: v5e:2x2
jax: 0.10.0
libtpu: 0.0.40
codegen_flags: <defaults>
</compile_context>

<pallas_src>
import math
import jax
import jax.numpy as jnp
from jax.experimental import pallas as pl
from jax.experimental.pallas import tpu as pltpu


# --------------------------------------------------------------------------
# Kernels.  Grid = (n_tiles, m_tiles); m (reduction) axis is last.
# --------------------------------------------------------------------------
def _rpn_kernel_inplace(x_ref, w_ref, o_ref):
    """f32 output: accumulate directly into the VMEM-resident output block."""
    k = pl.program_id(1)

    @pl.when(k == 0)
    def _():
        o_ref[...] = jnp.zeros_like(o_ref)

    o_ref[...] += jnp.dot(
        x_ref[...], w_ref[...], preferred_element_type=jnp.float32
    )


def _rpn_kernel_scratch(x_ref, w_ref, o_ref, acc_ref):
    """Narrow output dtype: accumulate in an f32 scratch, cast on the last step."""
    k = pl.program_id(1)

    @pl.when(k == 0)
    def _():
        acc_ref[...] = jnp.zeros_like(acc_ref)

    acc_ref[...] += jnp.dot(
        x_ref[...], w_ref[...], preferred_element_type=jnp.float32
    )

    @pl.when(k == pl.num_programs(1) - 1)
    def _():
        o_ref[...] = acc_ref[...].astype(o_ref.dtype)


# --------------------------------------------------------------------------
# Helpers
# --------------------------------------------------------------------------
def _round_up(a: int, b: int) -> int:
    return (a + b - 1) // b * b


def _sublane_packing(dtype) -> int:
    # Sub-32-bit dtypes pack along sublanes: 8 rows (f32), 16 (bf16), 32 (8-bit).
    return {4: 8, 2: 16, 1: 32}[jnp.dtype(dtype).itemsize]


def _pick_tile(total_pad: int, t_max: int) -> int:
    """Largest multiple of 128 that divides total_pad and is <= t_max."""
    q = total_pad // 128
    best = 1
    for d in range(1, q + 1):
        if q % d == 0 and 128 * d <= t_max:
            best = d
    return 128 * best


# --------------------------------------------------------------------------
# One-time weight preparation (cache the result across forward calls).
# --------------------------------------------------------------------------
def prepare_rpn_weights(w_heads, wr_heads, *, weight_dtype=jnp.bfloat16):
    """Fold mean-over-heads + remainder + transpose + pad + cast, once.

    w_heads, wr_heads: [H, n, m]  ->  returns (w_prepared [m_pad, n_pad], m, n).
    """
    H, n, m = w_heads.shape
    assert wr_heads.shape == (H, n, m)
    # Single fused contraction: sum over heads + transpose, then the 1/H mean scale.
    w_eff = jnp.einsum("hnm->mn", w_heads + wr_heads) / float(H)  # [m, n], f32
    if weight_dtype is not None:
        w_eff = w_eff.astype(weight_dtype)
    m_pad = _round_up(m, 128)
    n_pad = _round_up(n, 128)
    if (m_pad, n_pad) != (m, n):
        w_eff = jnp.zeros((m_pad, n_pad), w_eff.dtype).at[:m, :n].set(w_eff)
    return w_eff, m, n


# --------------------------------------------------------------------------
# Forward pass
# --------------------------------------------------------------------------
def rpn_layer_forward(x, w_prepared, m, n, *, tn_max=1024, tk_max=2048,
                      weight_buffers=None):
    """x: [B, m]; w_prepared: [m_pad, n_pad] from prepare_rpn_weights -> [B, n]."""
    B, m_in = x.shape
    assert m_in == m
    m_pad, n_pad = w_prepared.shape
    assert m_pad == _round_up(m, 128) and n_pad == _round_up(n, 128)

    compute_dtype = w_prepared.dtype
    out_dtype = x.dtype

    # Pad batch to the compute dtype's sublane packing; skip copies if aligned.
    B_pad = _round_up(B, _sublane_packing(compute_dtype))
    x_c = x.astype(compute_dtype)
    if (B_pad, m_pad) != (B, m):
        x_p = jnp.zeros((B_pad, m_pad), compute_dtype).at[:B, :m].set(x_c)
    else:
        x_p = x_c

    # Tile selection: largest lane-aligned divisors up to the caps.
    tn = _pick_tile(n_pad, tn_max)
    tk = _pick_tile(m_pad, tk_max)
    # v7x has 2 TensorCores: make sure the parallel (n) axis has >= 2 blocks
    # whenever the padded output width allows it.
    if n_pad // tn < 2 and n_pad >= 256:
        q = n_pad // 128
        for d in range(q // 2, 0, -1):
            if q % d == 0:
                tn = 128 * d
                break

    grid = (n_pad // tn, m_pad // tk)

    use_inplace = jnp.dtype(out_dtype) == jnp.float32
    kernel = _rpn_kernel_inplace if use_inplace else _rpn_kernel_scratch
    scratch = [] if use_inplace else [pltpu.VMEM((B_pad, tn), jnp.float32)]

    # Optional deeper weight prefetch (sweepable); default keeps double-buffering.
    w_spec_kwargs = {}
    if weight_buffers is not None and weight_buffers != 2:
        w_spec_kwargs["pipeline_mode"] = pl.Buffered(weight_buffers)

    # Raise the scoped VMEM limit enough for the chosen (double-)buffered tiles,
    # capped at the v7x per-core physical 64 MiB.
    itemsize_c = jnp.dtype(compute_dtype).itemsize
    itemsize_o = jnp.dtype(out_dtype).itemsize
    wbuf = weight_buffers if weight_buffers is not None else 2
    vmem_needed = (2 * B_pad * tk * itemsize_c
                   + wbuf * tk * tn * itemsize_c
                   + 2 * B_pad * tn * itemsize_o
                   + (0 if use_inplace else B_pad * tn * 4))
    vmem_limit = int(min(64 << 20, max(2 * vmem_needed, 16 << 20)))

    out = pl.pallas_call(
        kernel,
        out_shape=jax.ShapeDtypeStruct((B_pad, n_pad), out_dtype),
        grid_spec=pltpu.PrefetchScalarGridSpec(
            num_scalar_prefetch=0,
            grid=grid,
            in_specs=[
                # x tile: resident across n-tiles, streamed over m.
                pl.BlockSpec((B_pad, tk), lambda j, k: (0, k)),
                # folded weight tile [tk, tn] (already transposed, scaled, padded).
                pl.BlockSpec((tk, tn), lambda j, k: (k, j), **w_spec_kwargs),
            ],
            out_specs=pl.BlockSpec((B_pad, tn), lambda j, k: (0, j)),
            scratch_shapes=scratch,
        ),
        compiler_params=pltpu.CompilerParams(
            dimension_semantics=("parallel", "arbitrary"),
            vmem_limit_bytes=vmem_limit,
        ),
    )(x_p, w_prepared)

    return out[:B, :n]


def _xavier_uniform(key, shape):
    # xavier_uniform over the last two dims (fan_in = shape[-1], fan_out = shape[-2])
    fan_in, fan_out = shape[-1], shape[-2]
    bound = math.sqrt(6.0 / (fan_in + fan_out))
    return jax.random.uniform(key, shape, jnp.float32, -bound, bound)


if __name__ == "__main__":
    # Small deterministic problem consistent with forward(): x.ndim == 2, x.shape[1] == m.
    B, m, n, H = 2, 32, 16, 4

    key = jax.random.PRNGKey(0)
    kx, kw, kr = jax.random.split(key, 3)

    x = jax.random.normal(kx, (B, m), jnp.float32)
    w_heads = _xavier_uniform(kw, (H, n, m))    # psi^{(h)}(w^{(h)})
    wr_heads = _xavier_uniform(kr, (H, n, m))   # linear remainder weights pi^{(h)}

    # Pure-JAX reference of the same forward pass (per-head outputs, mean fusion).
    ref = jnp.einsum("bm,hnm->bn", x, w_heads + wr_heads) / float(H)

    # Exact f32 weight path (weights prepared once, reused across calls).
    w_f32, m_l, n_l = prepare_rpn_weights(w_heads, wr_heads, weight_dtype=jnp.float32)
    out_f32 = rpn_layer_forward(x, w_f32, m_l, n_l)
    out_f32 = jax.block_until_ready(out_f32)
    assert out_f32.shape == (B, n)
    assert jnp.allclose(out_f32, ref, atol=1e-5, rtol=1e-5), "f32 path mismatch"

    # Default bf16 weight-streaming path (f32 accumulation inside the kernel).
    w_bf16, _, _ = prepare_rpn_weights(w_heads, wr_heads)          # bf16 default
    out_bf16 = rpn_layer_forward(x, w_bf16, m_l, n_l)
    out_bf16 = rpn_layer_forward(x, w_bf16, m_l, n_l)  # reuses cached prep
    out_bf16 = jax.block_until_ready(out_bf16)
    assert out_bf16.shape == (B, n)
    assert jnp.allclose(out_bf16, ref, atol=5e-2, rtol=5e-2), "bf16 path mismatch"

    print("KERNEL_OK")
</pallas_src>

<mosaic_0001>
module attributes {stable_mosaic.version = 11 : i64} {
  func.func @_rpn_kernel_inplace(%arg0: i32, %arg1: i32, %arg2: memref<8x128xf32, #tpu.memory_space<vmem>>, %arg3: memref<128x128xf32, #tpu.memory_space<vmem>>, %arg4: memref<8x128xf32, #tpu.memory_space<vmem>>) attributes {dimension_semantics = [#tpu.dimension_semantics<parallel>, #tpu.dimension_semantics<arbitrary>], iteration_bounds = array<i64: 1, 1>, scalar_prefetch = 0 : i64, scratch_operands = 0 : i64, tpu.core_type = #tpu.core_type<tc>, window_params = [{transform_indices = @transform_0, window_bounds = array<i64: 8, 128>}, {transform_indices = @transform_1, window_bounds = array<i64: 128, 128>}, {transform_indices = @transform_2, window_bounds = array<i64: 8, 128>}]} {
    %c0_i32 = arith.constant 0 : i32
    %0 = arith.cmpi eq, %arg1, %c0_i32 : i32
    %1 = arith.extui %0 : i1 to i32
    %c0_i32_0 = arith.constant 0 : i32
    %2 = arith.cmpi ne, %1, %c0_i32_0 : i32
    scf.if %2 {
      %cst_8 = arith.constant 0.000000e+00 : f32
      %9 = vector.broadcast %cst_8 : f32 to vector<8x128xf32>
      %c0_9 = arith.constant 0 : index
      %c0_10 = arith.constant 0 : index
      %10 = vector.load %arg4[%c0_9, %c0_10] : memref<8x128xf32, #tpu.memory_space<vmem>>, vector<8x128xf32>
      tpu.vector_store %arg4[%c0_9, %c0_10], %9 {strides = array<i32>} : memref<8x128xf32, #tpu.memory_space<vmem>>, vector<8x128xf32>,
    } else {
    }
    %c0 = arith.constant 0 : index
    %c0_1 = arith.constant 0 : index
    %3 = vector.load %arg4[%c0, %c0_1] : memref<8x128xf32, #tpu.memory_space<vmem>>, vector<8x128xf32>
    %c0_2 = arith.constant 0 : index
    %c0_3 = arith.constant 0 : index
    %4 = vector.load %arg2[%c0_2, %c0_3] : memref<8x128xf32, #tpu.memory_space<vmem>>, vector<8x128xf32>
    %c0_4 = arith.constant 0 : index
    %c0_5 = arith.constant 0 : index
    %5 = vector.load %arg3[%c0_4, %c0_5] : memref<128x128xf32, #tpu.memory_space<vmem>>, vector<128x128xf32>
    %cst = arith.constant dense<0.000000e+00> : vector<8x128xf32>
    %6 = tpu.matmul %4, %5, %cst {dimension_numbers = #tpu.dot_dimension_numbers<[1], [0], [0], [1], [0, 0, 1, 1], [], []>} : vector<8x128xf32>, vector<128x128xf32>, vector<8x128xf32> -> vector<8x128xf32>
    %7 = arith.addf %3, %6 : vector<8x128xf32>
    %c0_6 = arith.constant 0 : index
    %c0_7 = arith.constant 0 : index
    %8 = vector.load %arg4[%c0_6, %c0_7] : memref<8x128xf32, #tpu.memory_space<vmem>>, vector<8x128xf32>
    tpu.vector_store %arg4[%c0_6, %c0_7], %7 {strides = array<i32>} : memref<8x128xf32, #tpu.memory_space<vmem>>, vector<8x128xf32>,
    return
  }
  func.func @transform_0(%arg0: i32, %arg1: i32) -> (i32, i32) {
    %c0_i32 = arith.constant 0 : i32
    %c0_i32_0 = arith.constant 0 : i32
    return %c0_i32, %arg1 : i32, i32
  }
  func.func @transform_1(%arg0: i32, %arg1: i32) -> (i32, i32) {
    %c0_i32 = arith.constant 0 : i32
    return %arg1, %arg0 : i32, i32
  }
  func.func @transform_2(%arg0: i32, %arg1: i32) -> (i32, i32) {
    %c0_i32 = arith.constant 0 : i32
    %c0_i32_0 = arith.constant 0 : i32
    return %c0_i32, %arg0 : i32, i32
  }
}

</mosaic_0001>

<bundles_post_ra>
// kernel: tpu_custom_call.1
= control target key start
LH: loop header
LB: loop body
LE: loop exit
PB: predicated region body
PF: predicated region fallthrough
CT: control target
= control target key end

     0   :  { %7 = vsyncpa [#allocation3], 0  ;;  %s218_s0 = inlined_call_operand.hbm [shape: f32[8,128], index: 0, kind: input, shape index: {}]   ;;  %s219_s1 = inlined_call_operand.hbm [shape: f32[128,128], index: 1, kind: input, shape index: {}]   ;;  %s220_s2 = inlined_call_operand.hbm [shape: f32[8,128], index: 2, kind: output, shape index: {}]  }
   0x1   :  { %8 = vsyncpa [#allocation6], 0 }
   0x2   :  { %9 = vsyncpa [#allocation4], 0  ;;  %s15_s11 = sshll.u32 %s218_s0, 4  ;;  %s189_s12 = smov [#allocation2]   ;;  %s16_s11 = int_to_ptr.hbm [resolvable:$true] %s15_s11 }
   0x3   :  { %s17_s13 = sshll.u32 %s189_s12, 4  ;;  %s25_s16 = sshll.u32 %s219_s1, 4  ;;  %s18_s13 = int_to_ptr.vmem [resolvable:$true] %s17_s13  ;;  %s26_s16 = int_to_ptr.hbm [resolvable:$true] %s25_s16 }
   0x4   :  { %20 = dma.hbm_to_vmem [thread:$0]  %s16_s11, 128, %s18_s13, [#allocation3]  }
   0x5   :  { %s190_s17 = smov [#allocation5]   ;;  %s191_s19 = smov 128  }
   0x6   :  { %s27_s18 = sshll.u32 %s190_s17, 4  ;;  %s192_s20 = smov 8   ;;  %s28_s18 = int_to_ptr.vmem [resolvable:$true] %s27_s18 }
   0x7   :  { %33 = dma.hbm_to_vmem [thread:$0]  %s26_s16, 2048, %s28_s18, [#allocation6], %s191_s19, %s191_s19, %s192_s20  }
   0x8   :  { %183 = dma.done.wait [#allocation3], 128  }
   0x9   :  { %184 = vsyncadd [#allocation3], 4294967168 }
   0xa   :  { %185 = dma.done.wait [#allocation6], 2048  }
   0xb   :  { %186 = vsyncadd [#allocation6], 4294965248  ;;  %v64_v0 = vld [vmem:[#allocation5 + $0x78] sm:$0xff]  ;;  %v63_v1 = vld [vmem:[#allocation5 + $0x70] sm:$0xff]  ;;  %s193_s0 = smov [#allocation7]   ;;  %s94_s23 = sshll.u32 %s220_s2, 4  ;;  %s95_s23 = int_to_ptr.hbm [resolvable:$true] %s94_s23 }
   0xc   :  { %65 = vmatpush.msra.mxu0 %v64_v0  ;;  %v62_v2 = vld [vmem:[#allocation5 + $0x68] sm:$0xff]  ;;  %v61_v3 = vld [vmem:[#allocation5 + $0x60] sm:$0xff]  ;;  %v60_v4 = vld [vmem:[#allocation5 + $0x58] sm:$0xff]  ;;  %s92_s1 = sshll.u32 %s193_s0, 4  ;;  %s93_s1 = int_to_ptr.vmem [resolvable:$true] %s92_s1 }
   0xd   :  { %v59_v5 = vld [vmem:[#allocation5 + $0x50] sm:$0xff]  ;;  %v58_v6 = vld [vmem:[#allocation5 + $0x48] sm:$0xff]  ;;  %v57_v7 = vld [vmem:[#allocation5 + $0x40] sm:$0xff] }
   0xe   :  { %66 = vmatpush.msra.mxu0 %v63_v1  ;;  %v56_v8 = vld [vmem:[#allocation5 + $0x38] sm:$0xff]  ;;  %v55_v9 = vld [vmem:[#allocation5 + $0x30] sm:$0xff]  ;;  %v54_v10 = vld [vmem:[#allocation5 + $0x28] sm:$0xff] }
   0xf   :  { %v53_v11 = vld [vmem:[#allocation5 + $0x20] sm:$0xff]  ;;  %v52_v12 = vld [vmem:[#allocation5 + $0x18] sm:$0xff]  ;;  %v51_v13 = vld [vmem:[#allocation5 + $0x10] sm:$0xff] }
  0x10   :  { %67 = vmatpush.msra.mxu0 %v62_v2  ;;  %v50_v14 = vld [vmem:[#allocation5 + $0x8] sm:$0xff]  ;;  %v49_v15 = vld [vmem:[#allocation5] sm:$0xff]  ;;  %v48_v16 = vld [vmem:[#allocation2] sm:$0xff] }
  0x12   :  { %68 = vmatpush.msra.mxu0 %v61_v3 }
  0x14   :  { %69 = vmatpush.msra.mxu0 %v60_v4 }
  0x16   :  { %70 = vmatpush.msra.mxu0 %v59_v5 }
  0x18   :  { %71 = vmatpush.msra.mxu0 %v58_v6 }
  0x1a   :  { %72 = vmatpush.msra.mxu0 %v57_v7 }
  0x1c   :  { %73 = vmatpush.msra.mxu0 %v56_v8 }
  0x1e   :  { %74 = vmatpush.msra.mxu0 %v55_v9 }
  0x20   :  { %75 = vmatpush.msra.mxu0 %v54_v10 }
  0x22   :  { %76 = vmatpush.msra.mxu0 %v53_v11 }
  0x24   :  { %77 = vmatpush.msra.mxu0 %v52_v12 }
  0x26   :  { %78 = vmatpush.msra.mxu0 %v51_v13 }
  0x28   :  { %79 = vmatpush.msra.mxu0 %v50_v14 }
  0x2a   :  { %80 = vmatpush.msra.mxu0 %v49_v15 }
  0x2b   :  { %81 = vmatmul.f32.vlgmr.msra.gmra.mxu0 %v48_v16 }
  0xa8   :  { %v82_v17 = vpop.f32.mrf.mxu0 }
  0xa9   :  { %86 = vst [vmem:[#allocation7] sm:$0xff] %v82_v17 }
  0xaa   :  { %97 = dma.vmem_to_hbm [thread:$0]  %s93_s1, 128, %s95_s23, [#allocation4]  }
  0xab   :  { %187 = dma.done.wait [#allocation4], 128  }
  0xac   :  { %188 = vsyncadd [#allocation4], 4294967168 }
  0xad   :  { %102 = vsyncpa [#allocation3], 1 }
  0xae   :  { %103 = vsyncpa [#allocation6], 1 }
  0xaf   :  { %104 = vsyncpa [#allocation4], 1 }

</bundles_post_ra>
